<compile_context>
chip_gen: v5e
topology: v5e:2x2
jax: 0.10.0
libtpu: 0.0.40
codegen_flags: <defaults>
</compile_context>

<pallas_src>
import functools

import jax
import jax.numpy as jnp
from jax import lax
from jax.experimental import pallas as pl
from jax.experimental.pallas import tpu as pltpu

# ----------------------------- model hyper-parameters -----------------------------
BATCH = 8          # batch (module is batch-agnostic; 8 fills the vreg sublanes)
SEQ = 6            # sequence_len
N_VOCAB = 64
EMB = 32           # embedding_dim
HID = 32           # hidden_dim
# n_layers = 1 (dropout between LSTM layers is a no-op), bidirectional = True


def _classifier_kernel(ids_ref,   # [T*B, 1] int32  time-major token ids
                       w_ref,     # [V+H, 8H] bf16  rows 0:V = gate table (emb@W_ih + b, g-cols x2)
                                  #                 rows V:V+H, cols 0:4H = W_hh_f (g-cols x2)
                       wc_ref,    # [1, 2H] f32     classifier weight
                       bc_ref,    # [1]     f32     classifier bias (SMEM)
                       out_ref,   # [B, 1]  f32     logits
                       *, seq_len, batch, hidden, vocab):
    T, B, H, V = seq_len, batch, hidden, vocab

    # ----- in-kernel embedding gather + input projection: ONE bf16 MXU matmul --------
    # gate_table rows already hold emb[v] @ W_ih.T + b_ih + b_hh for BOTH directions,
    # so the one-hot matmul is an exact selection of the pre-projected bf16 gate rows.
    ids = ids_ref[...]                                                  # [T*B, 1] int32
    iota = lax.broadcasted_iota(jnp.int32, (T * B, V), 1)
    onehot = jnp.where(ids == iota, 1.0, 0.0).astype(jnp.bfloat16)      # [T*B, V]
    gates_x = jnp.dot(onehot, w_ref[0:V, :],
                      preferred_element_type=jnp.float32)               # [T*B, 8H] f32

    whh_f = w_ref[V:V + H, 0:4 * H]                                     # [H, 4H] bf16

    def act(g):
        # Single EUP pass: sigmoid over the whole [B, 4H] (128-lane) vreg.  PyTorch gate
        # order (i, f, g, o); the g-gate pre-activations arrive pre-scaled by 2, so
        # tanh(z) = 2*sigmoid(2z) - 1 is just a VPU fixup on lanes 2H:3H.
        s = jax.nn.sigmoid(g)
        return (s[:, 0:H], s[:, H:2 * H],
                2.0 * s[:, 2 * H:3 * H] - 1.0, s[:, 3 * H:4 * H])

    # --------------------------- forward recurrence (unrolled) -----------------------
    # whh_f is loop-invariant; plain jnp.dot per step is kept (explicit weight-stationary
    # MXU driving via pltpu.matmul_push_rhs is a modest win, not worth the lowering risk).
    h = jnp.zeros((B, H), jnp.float32)
    c = jnp.zeros((B, H), jnp.float32)
    for t in range(T):                                                  # static unroll
        g = gates_x[t * B:(t + 1) * B, 0:4 * H] + jnp.dot(
            h.astype(jnp.bfloat16), whh_f, preferred_element_type=jnp.float32)
        i_g, f_g, g_g, o_g = act(g)
        c = f_g * c + i_g * g_g
        h = o_g * jnp.tanh(c)
    h_fwd = h

    # ------------------------------ backward direction -------------------------------
    # output[:, -1, H:2H] of a PyTorch bidirectional LSTM is the reverse cell right
    # after its first step (x[T-1], zero state): h_prev @ W_hh_b == 0 and f*c_prev == 0,
    # so W_hh_b and a reverse recurrence are never needed.
    gb = gates_x[(T - 1) * B:T * B, 4 * H:8 * H]
    i_b, _f_b, g_b, o_b = act(gb)
    h_bwd = o_b * jnp.tanh(i_b * g_b)

    # TODO(synk): nn.Dropout(0.5) is identity in eval/inference mode; not applied here.

    # ----------- classifier: VPU multiply-add + ONE fused cross-lane reduction -------
    wc = wc_ref[...]                                                    # [1, 2H] f32
    logit = jnp.sum(h_fwd * wc[:, 0:H] + h_bwd * wc[:, H:2 * H],
                    axis=-1, keepdims=True) + bc_ref[0]
    out_ref[...] = logit.astype(out_ref.dtype)


def init_params(key):
    """Kernel-ready params (embedding/bias folded, g-gate pre-scaled, packed into one
    bf16 slab) plus the raw PyTorch-layout weights for the pure-JAX reference."""
    ks = jax.random.split(key, 11)
    bound = HID ** -0.5

    def u(k, shape):
        return jax.random.uniform(k, shape, jnp.float32, -bound, bound)

    emb = jax.random.normal(ks[0], (N_VOCAB, EMB), jnp.float32)
    emb = emb.at[0].set(0.0)                       # padding_idx=0 row zeroed

    raw = {
        "embedding": emb,
        "w_ih_f": u(ks[1], (4 * HID, EMB)),  "w_hh_f": u(ks[2], (4 * HID, HID)),
        "b_ih_f": u(ks[3], (4 * HID,)),      "b_hh_f": u(ks[4], (4 * HID,)),
        "w_ih_b": u(ks[5], (4 * HID, EMB)),  "w_hh_b": u(ks[6], (4 * HID, HID)),
        "b_ih_b": u(ks[7], (4 * HID,)),      "b_hh_b": u(ks[8], (4 * HID,)),
        "w_cls":  u(ks[9], (1, 2 * HID)),    "b_cls":  u(ks[10], (1,)),
    }

    def scale_g(x):   # pre-scale the g-gate block (cols 2H:3H) by 2 for tanh-via-sigmoid
        return x.at[..., 2 * HID:3 * HID].multiply(2.0)

    # Embedding + input weights + both biases folded into per-token gate tables (f32 math).
    tab_f = scale_g(emb @ raw["w_ih_f"].T + (raw["b_ih_f"] + raw["b_hh_f"])[None, :])  # [V, 4H]
    tab_b = scale_g(emb @ raw["w_ih_b"].T + (raw["b_ih_b"] + raw["b_hh_b"])[None, :])  # [V, 4H]
    table = jnp.concatenate([tab_f, tab_b], axis=1)                                    # [V, 8H]

    whh_f_t = scale_g(raw["w_hh_f"].T)                                                 # [H, 4H]
    whh_row = jnp.zeros((HID, 8 * HID), jnp.float32).at[:, 0:4 * HID].set(whh_f_t)

    params = {
        "w_slab": jnp.concatenate([table, whh_row], axis=0).astype(jnp.bfloat16),  # [V+H, 8H]
        "w_cls": raw["w_cls"],                                                     # [1, 2H] f32
        "b_cls": raw["b_cls"],                                                     # [1]     f32
    }
    return params, raw


@jax.jit
def sentence_classifier_forward(token_ids, params):
    batch, seq = token_ids.shape
    # Time-major flat token ids: the only out-of-kernel data movement (tiny int copy).
    ids_tm = jnp.swapaxes(token_ids, 0, 1).reshape(seq * batch, 1).astype(jnp.int32)

    kernel = functools.partial(_classifier_kernel,
                               seq_len=seq, batch=batch, hidden=HID, vocab=N_VOCAB)
    vmem = pl.BlockSpec(memory_space=pltpu.MemorySpace.VMEM)
    smem = pl.BlockSpec(memory_space=pltpu.MemorySpace.SMEM)
    return pl.pallas_call(
        kernel,
        out_shape=jax.ShapeDtypeStruct((batch, 1), jnp.float32),
        in_specs=[vmem, vmem, vmem, smem],
        out_specs=vmem,
    )(ids_tm, params["w_slab"], params["w_cls"], params["b_cls"])


def reference_forward(token_ids, raw):
    """Pure-JAX f32 reference matching the PyTorch module forward (eval mode)."""
    def cell(x_t, h, c, w_ih, w_hh, b_ih, b_hh):
        g = x_t @ w_ih.T + h @ w_hh.T + b_ih + b_hh
        i, f, gg, o = jnp.split(g, 4, axis=-1)
        c = jax.nn.sigmoid(f) * c + jax.nn.sigmoid(i) * jnp.tanh(gg)
        h = jax.nn.sigmoid(o) * jnp.tanh(c)
        return h, c

    x = raw["embedding"][token_ids]                       # [B, T, E]
    B, T, _ = x.shape
    h = c = jnp.zeros((B, HID), jnp.float32)
    for t in range(T):
        h, c = cell(x[:, t], h, c, raw["w_ih_f"], raw["w_hh_f"], raw["b_ih_f"], raw["b_hh_f"])
    h_fwd_last = h

    hb = cb = jnp.zeros((B, HID), jnp.float32)
    h_bwd_at_last = None
    for t in range(T - 1, -1, -1):                        # full reverse scan (reference)
        hb, cb = cell(x[:, t], hb, cb, raw["w_ih_b"], raw["w_hh_b"], raw["b_ih_b"], raw["b_hh_b"])
        if t == T - 1:
            h_bwd_at_last = hb                            # reverse output at the last timestep
    last = jnp.concatenate([h_fwd_last, h_bwd_at_last], axis=-1)
    return last @ raw["w_cls"].T + raw["b_cls"]           # [B, 1]


if __name__ == "__main__":
    key = jax.random.PRNGKey(0)
    pkey, dkey = jax.random.split(key)

    params, raw = init_params(pkey)
    token_ids = jax.random.randint(dkey, (BATCH, SEQ), 0, N_VOCAB, dtype=jnp.int32)

    logits = sentence_classifier_forward(token_ids, params)
    jax.block_until_ready(logits)

    assert logits.shape == (BATCH, 1)
    assert logits.dtype == jnp.float32

    # Correctness vs. pure-JAX f32 reference (bf16 MXU operands -> loose tolerance).
    ref = reference_forward(token_ids, raw)
    err = float(jnp.max(jnp.abs(logits - ref)))
    assert err < 5e-2, f"max abs error vs reference: {err}"

    print("KERNEL_OK")
</pallas_src>

<mosaic_0001>
module attributes {stable_mosaic.version = 11 : i64} {
  func.func @_classifier_kernel(%arg0: memref<48x1xi32, #tpu.memory_space<vmem>>, %arg1: memref<96x256xbf16, #tpu.memory_space<vmem>>, %arg2: memref<1x64xf32, #tpu.memory_space<vmem>>, %arg3: memref<1xf32, #tpu.memory_space<smem>>, %arg4: memref<8x1xf32, #tpu.memory_space<vmem>>) attributes {dimension_semantics = [], scalar_prefetch = 0 : i64, scratch_operands = 0 : i64, tpu.core_type = #tpu.core_type<tc>} {
    %c0 = arith.constant 0 : index
    %c0_0 = arith.constant 0 : index
    %0 = vector.load %arg0[%c0, %c0_0] : memref<48x1xi32, #tpu.memory_space<vmem>>, vector<48x1xi32>
    %1 = tpu.iota {dimensions = array<i32: 1>} : vector<48x64xi32>
    %2 = vector.broadcast %0 : vector<48x1xi32> to vector<48x64xi32>
    %3 = arith.cmpi eq, %2, %1 : vector<48x64xi32>
    %cst = arith.constant 1.000000e+00 : f32
    %cst_1 = arith.constant 0.000000e+00 : f32
    %4 = vector.broadcast %cst : f32 to vector<48x64xf32>
    %5 = vector.broadcast %cst_1 : f32 to vector<48x64xf32>
    %6 = arith.select %3, %4, %5 : vector<48x64xi1>, vector<48x64xf32>
    %7 = arith.truncf %6 : vector<48x64xf32> to vector<48x64xbf16>
    %c0_2 = arith.constant 0 : index
    %c0_3 = arith.constant 0 : index
    %8 = vector.load %arg1[%c0_2, %c0_3] : memref<96x256xbf16, #tpu.memory_space<vmem>>, vector<64x256xbf16>
    %cst_4 = arith.constant dense<0.000000e+00> : vector<48x256xf32>
    %9 = tpu.matmul %7, %8, %cst_4 {dimension_numbers = #tpu.dot_dimension_numbers<[1], [0], [0], [1], [0, 0, 1, 1], [], []>} : vector<48x64xbf16>, vector<64x256xbf16>, vector<48x256xf32> -> vector<48x256xf32>
    %c64 = arith.constant 64 : index
    %c0_5 = arith.constant 0 : index
    %10 = vector.load %arg1[%c64, %c0_5] : memref<96x256xbf16, #tpu.memory_space<vmem>>, vector<32x128xbf16>
    %cst_6 = arith.constant 0.000000e+00 : f32
    %11 = vector.broadcast %cst_6 : f32 to vector<8x32xf32>
    %cst_7 = arith.constant 0.000000e+00 : f32
    %12 = vector.broadcast %cst_7 : f32 to vector<8x32xf32>
    %13 = vector.extract_strided_slice %9 {offsets = [0, 0], sizes = [8, 128], strides = [1, 1]} : vector<48x256xf32> to vector<8x128xf32>
    %14 = arith.truncf %11 : vector<8x32xf32> to vector<8x32xbf16>
    %cst_8 = arith.constant dense<0.000000e+00> : vector<8x128xf32>
    %15 = tpu.matmul %14, %10, %cst_8 {dimension_numbers = #tpu.dot_dimension_numbers<[1], [0], [0], [1], [0, 0, 1, 1], [], []>} : vector<8x32xbf16>, vector<32x128xbf16>, vector<8x128xf32> -> vector<8x128xf32>
    %16 = arith.addf %13, %15 : vector<8x128xf32>
    %17 = arith.negf %16 : vector<8x128xf32>
    %18 = math.exp %17 : vector<8x128xf32>
    %cst_9 = arith.constant 1.000000e+00 : f32
    %19 = vector.broadcast %cst_9 : f32 to vector<8x128xf32>
    %20 = arith.addf %19, %18 : vector<8x128xf32>
    %21 = arith.divf %19, %20 : vector<8x128xf32>
    %22 = vector.extract_strided_slice %21 {offsets = [0, 0], sizes = [8, 32], strides = [1, 1]} : vector<8x128xf32> to vector<8x32xf32>
    %23 = vector.extract_strided_slice %21 {offsets = [0, 32], sizes = [8, 32], strides = [1, 1]} : vector<8x128xf32> to vector<8x32xf32>
    %24 = vector.extract_strided_slice %21 {offsets = [0, 64], sizes = [8, 32], strides = [1, 1]} : vector<8x128xf32> to vector<8x32xf32>
    %cst_10 = arith.constant 2.000000e+00 : f32
    %25 = vector.broadcast %cst_10 : f32 to vector<8x32xf32>
    %26 = arith.mulf %25, %24 : vector<8x32xf32>
    %cst_11 = arith.constant 1.000000e+00 : f32
    %27 = vector.broadcast %cst_11 : f32 to vector<8x32xf32>
    %28 = arith.subf %26, %27 : vector<8x32xf32>
    %29 = vector.extract_strided_slice %21 {offsets = [0, 96], sizes = [8, 32], strides = [1, 1]} : vector<8x128xf32> to vector<8x32xf32>
    %30 = arith.mulf %23, %12 : vector<8x32xf32>
    %31 = arith.mulf %22, %28 : vector<8x32xf32>
    %32 = arith.addf %30, %31 : vector<8x32xf32>
    %33 = math.tanh %32 : vector<8x32xf32>
    %34 = arith.mulf %29, %33 : vector<8x32xf32>
    %35 = vector.extract_strided_slice %9 {offsets = [8, 0], sizes = [8, 128], strides = [1, 1]} : vector<48x256xf32> to vector<8x128xf32>
    %36 = arith.truncf %34 : vector<8x32xf32> to vector<8x32xbf16>
    %cst_12 = arith.constant dense<0.000000e+00> : vector<8x128xf32>
    %37 = tpu.matmul %36, %10, %cst_12 {dimension_numbers = #tpu.dot_dimension_numbers<[1], [0], [0], [1], [0, 0, 1, 1], [], []>} : vector<8x32xbf16>, vector<32x128xbf16>, vector<8x128xf32> -> vector<8x128xf32>
    %38 = arith.addf %35, %37 : vector<8x128xf32>
    %39 = arith.negf %38 : vector<8x128xf32>
    %40 = math.exp %39 : vector<8x128xf32>
    %cst_13 = arith.constant 1.000000e+00 : f32
    %41 = vector.broadcast %cst_13 : f32 to vector<8x128xf32>
    %42 = arith.addf %41, %40 : vector<8x128xf32>
    %43 = arith.divf %41, %42 : vector<8x128xf32>
    %44 = vector.extract_strided_slice %43 {offsets = [0, 0], sizes = [8, 32], strides = [1, 1]} : vector<8x128xf32> to vector<8x32xf32>
    %45 = vector.extract_strided_slice %43 {offsets = [0, 32], sizes = [8, 32], strides = [1, 1]} : vector<8x128xf32> to vector<8x32xf32>
    %46 = vector.extract_strided_slice %43 {offsets = [0, 64], sizes = [8, 32], strides = [1, 1]} : vector<8x128xf32> to vector<8x32xf32>
    %cst_14 = arith.constant 2.000000e+00 : f32
    %47 = vector.broadcast %cst_14 : f32 to vector<8x32xf32>
    %48 = arith.mulf %47, %46 : vector<8x32xf32>
    %cst_15 = arith.constant 1.000000e+00 : f32
    %49 = vector.broadcast %cst_15 : f32 to vector<8x32xf32>
    %50 = arith.subf %48, %49 : vector<8x32xf32>
    %51 = vector.extract_strided_slice %43 {offsets = [0, 96], sizes = [8, 32], strides = [1, 1]} : vector<8x128xf32> to vector<8x32xf32>
    %52 = arith.mulf %45, %32 : vector<8x32xf32>
    %53 = arith.mulf %44, %50 : vector<8x32xf32>
    %54 = arith.addf %52, %53 : vector<8x32xf32>
    %55 = math.tanh %54 : vector<8x32xf32>
    %56 = arith.mulf %51, %55 : vector<8x32xf32>
    %57 = vector.extract_strided_slice %9 {offsets = [16, 0], sizes = [8, 128], strides = [1, 1]} : vector<48x256xf32> to vector<8x128xf32>
    %58 = arith.truncf %56 : vector<8x32xf32> to vector<8x32xbf16>
    %cst_16 = arith.constant dense<0.000000e+00> : vector<8x128xf32>
    %59 = tpu.matmul %58, %10, %cst_16 {dimension_numbers = #tpu.dot_dimension_numbers<[1], [0], [0], [1], [0, 0, 1, 1], [], []>} : vector<8x32xbf16>, vector<32x128xbf16>, vector<8x128xf32> -> vector<8x128xf32>
    %60 = arith.addf %57, %59 : vector<8x128xf32>
    %61 = arith.negf %60 : vector<8x128xf32>
    %62 = math.exp %61 : vector<8x128xf32>
    %cst_17 = arith.constant 1.000000e+00 : f32
    %63 = vector.broadcast %cst_17 : f32 to vector<8x128xf32>
    %64 = arith.addf %63, %62 : vector<8x128xf32>
    %65 = arith.divf %63, %64 : vector<8x128xf32>
    %66 = vector.extract_strided_slice %65 {offsets = [0, 0], sizes = [8, 32], strides = [1, 1]} : vector<8x128xf32> to vector<8x32xf32>
    %67 = vector.extract_strided_slice %65 {offsets = [0, 32], sizes = [8, 32], strides = [1, 1]} : vector<8x128xf32> to vector<8x32xf32>
    %68 = vector.extract_strided_slice %65 {offsets = [0, 64], sizes = [8, 32], strides = [1, 1]} : vector<8x128xf32> to vector<8x32xf32>
    %cst_18 = arith.constant 2.000000e+00 : f32
    %69 = vector.broadcast %cst_18 : f32 to vector<8x32xf32>
    %70 = arith.mulf %69, %68 : vector<8x32xf32>
    %cst_19 = arith.constant 1.000000e+00 : f32
    %71 = vector.broadcast %cst_19 : f32 to vector<8x32xf32>
    %72 = arith.subf %70, %71 : vector<8x32xf32>
    %73 = vector.extract_strided_slice %65 {offsets = [0, 96], sizes = [8, 32], strides = [1, 1]} : vector<8x128xf32> to vector<8x32xf32>
    %74 = arith.mulf %67, %54 : vector<8x32xf32>
    %75 = arith.mulf %66, %72 : vector<8x32xf32>
    %76 = arith.addf %74, %75 : vector<8x32xf32>
    %77 = math.tanh %76 : vector<8x32xf32>
    %78 = arith.mulf %73, %77 : vector<8x32xf32>
    %79 = vector.extract_strided_slice %9 {offsets = [24, 0], sizes = [8, 128], strides = [1, 1]} : vector<48x256xf32> to vector<8x128xf32>
    %80 = arith.truncf %78 : vector<8x32xf32> to vector<8x32xbf16>
    %cst_20 = arith.constant dense<0.000000e+00> : vector<8x128xf32>
    %81 = tpu.matmul %80, %10, %cst_20 {dimension_numbers = #tpu.dot_dimension_numbers<[1], [0], [0], [1], [0, 0, 1, 1], [], []>} : vector<8x32xbf16>, vector<32x128xbf16>, vector<8x128xf32> -> vector<8x128xf32>
    %82 = arith.addf %79, %81 : vector<8x128xf32>
    %83 = arith.negf %82 : vector<8x128xf32>
    %84 = math.exp %83 : vector<8x128xf32>
    %cst_21 = arith.constant 1.000000e+00 : f32
    %85 = vector.broadcast %cst_21 : f32 to vector<8x128xf32>
    %86 = arith.addf %85, %84 : vector<8x128xf32>
    %87 = arith.divf %85, %86 : vector<8x128xf32>
    %88 = vector.extract_strided_slice %87 {offsets = [0, 0], sizes = [8, 32], strides = [1, 1]} : vector<8x128xf32> to vector<8x32xf32>
    %89 = vector.extract_strided_slice %87 {offsets = [0, 32], sizes = [8, 32], strides = [1, 1]} : vector<8x128xf32> to vector<8x32xf32>
    %90 = vector.extract_strided_slice %87 {offsets = [0, 64], sizes = [8, 32], strides = [1, 1]} : vector<8x128xf32> to vector<8x32xf32>
    %cst_22 = arith.constant 2.000000e+00 : f32
    %91 = vector.broadcast %cst_22 : f32 to vector<8x32xf32>
    %92 = arith.mulf %91, %90 : vector<8x32xf32>
    %cst_23 = arith.constant 1.000000e+00 : f32
    %93 = vector.broadcast %cst_23 : f32 to vector<8x32xf32>
    %94 = arith.subf %92, %93 : vector<8x32xf32>
    %95 = vector.extract_strided_slice %87 {offsets = [0, 96], sizes = [8, 32], strides = [1, 1]} : vector<8x128xf32> to vector<8x32xf32>
    %96 = arith.mulf %89, %76 : vector<8x32xf32>
    %97 = arith.mulf %88, %94 : vector<8x32xf32>
    %98 = arith.addf %96, %97 : vector<8x32xf32>
    %99 = math.tanh %98 : vector<8x32xf32>
    %100 = arith.mulf %95, %99 : vector<8x32xf32>
    %101 = vector.extract_strided_slice %9 {offsets = [32, 0], sizes = [8, 128], strides = [1, 1]} : vector<48x256xf32> to vector<8x128xf32>
    %102 = arith.truncf %100 : vector<8x32xf32> to vector<8x32xbf16>
    %cst_24 = arith.constant dense<0.000000e+00> : vector<8x128xf32>
    %103 = tpu.matmul %102, %10, %cst_24 {dimension_numbers = #tpu.dot_dimension_numbers<[1], [0], [0], [1], [0, 0, 1, 1], [], []>} : vector<8x32xbf16>, vector<32x128xbf16>, vector<8x128xf32> -> vector<8x128xf32>
    %104 = arith.addf %101, %103 : vector<8x128xf32>
    %105 = arith.negf %104 : vector<8x128xf32>
    %106 = math.exp %105 : vector<8x128xf32>
    %cst_25 = arith.constant 1.000000e+00 : f32
    %107 = vector.broadcast %cst_25 : f32 to vector<8x128xf32>
    %108 = arith.addf %107, %106 : vector<8x128xf32>
    %109 = arith.divf %107, %108 : vector<8x128xf32>
    %110 = vector.extract_strided_slice %109 {offsets = [0, 0], sizes = [8, 32], strides = [1, 1]} : vector<8x128xf32> to vector<8x32xf32>
    %111 = vector.extract_strided_slice %109 {offsets = [0, 32], sizes = [8, 32], strides = [1, 1]} : vector<8x128xf32> to vector<8x32xf32>
    %112 = vector.extract_strided_slice %109 {offsets = [0, 64], sizes = [8, 32], strides = [1, 1]} : vector<8x128xf32> to vector<8x32xf32>
    %cst_26 = arith.constant 2.000000e+00 : f32
    %113 = vector.broadcast %cst_26 : f32 to vector<8x32xf32>
    %114 = arith.mulf %113, %112 : vector<8x32xf32>
    %cst_27 = arith.constant 1.000000e+00 : f32
    %115 = vector.broadcast %cst_27 : f32 to vector<8x32xf32>
    %116 = arith.subf %114, %115 : vector<8x32xf32>
    %117 = vector.extract_strided_slice %109 {offsets = [0, 96], sizes = [8, 32], strides = [1, 1]} : vector<8x128xf32> to vector<8x32xf32>
    %118 = arith.mulf %111, %98 : vector<8x32xf32>
    %119 = arith.mulf %110, %116 : vector<8x32xf32>
    %120 = arith.addf %118, %119 : vector<8x32xf32>
    %121 = math.tanh %120 : vector<8x32xf32>
    %122 = arith.mulf %117, %121 : vector<8x32xf32>
    %123 = vector.extract_strided_slice %9 {offsets = [40, 0], sizes = [8, 128], strides = [1, 1]} : vector<48x256xf32> to vector<8x128xf32>
    %124 = arith.truncf %122 : vector<8x32xf32> to vector<8x32xbf16>
    %cst_28 = arith.constant dense<0.000000e+00> : vector<8x128xf32>
    %125 = tpu.matmul %124, %10, %cst_28 {dimension_numbers = #tpu.dot_dimension_numbers<[1], [0], [0], [1], [0, 0, 1, 1], [], []>} : vector<8x32xbf16>, vector<32x128xbf16>, vector<8x128xf32> -> vector<8x128xf32>
    %126 = arith.addf %123, %125 : vector<8x128xf32>
    %127 = arith.negf %126 : vector<8x128xf32>
    %128 = math.exp %127 : vector<8x128xf32>
    %cst_29 = arith.constant 1.000000e+00 : f32
    %129 = vector.broadcast %cst_29 : f32 to vector<8x128xf32>
    %130 = arith.addf %129, %128 : vector<8x128xf32>
    %131 = arith.divf %129, %130 : vector<8x128xf32>
    %132 = vector.extract_strided_slice %131 {offsets = [0, 0], sizes = [8, 32], strides = [1, 1]} : vector<8x128xf32> to vector<8x32xf32>
    %133 = vector.extract_strided_slice %131 {offsets = [0, 32], sizes = [8, 32], strides = [1, 1]} : vector<8x128xf32> to vector<8x32xf32>
    %134 = vector.extract_strided_slice %131 {offsets = [0, 64], sizes = [8, 32], strides = [1, 1]} : vector<8x128xf32> to vector<8x32xf32>
    %cst_30 = arith.constant 2.000000e+00 : f32
    %135 = vector.broadcast %cst_30 : f32 to vector<8x32xf32>
    %136 = arith.mulf %135, %134 : vector<8x32xf32>
    %cst_31 = arith.constant 1.000000e+00 : f32
    %137 = vector.broadcast %cst_31 : f32 to vector<8x32xf32>
    %138 = arith.subf %136, %137 : vector<8x32xf32>
    %139 = vector.extract_strided_slice %131 {offsets = [0, 96], sizes = [8, 32], strides = [1, 1]} : vector<8x128xf32> to vector<8x32xf32>
    %140 = arith.mulf %133, %120 : vector<8x32xf32>
    %141 = arith.mulf %132, %138 : vector<8x32xf32>
    %142 = arith.addf %140, %141 : vector<8x32xf32>
    %143 = math.tanh %142 : vector<8x32xf32>
    %144 = arith.mulf %139, %143 : vector<8x32xf32>
    %145 = vector.extract_strided_slice %9 {offsets = [40, 128], sizes = [8, 128], strides = [1, 1]} : vector<48x256xf32> to vector<8x128xf32>
    %146 = arith.negf %145 : vector<8x128xf32>
    %147 = math.exp %146 : vector<8x128xf32>
    %cst_32 = arith.constant 1.000000e+00 : f32
    %148 = vector.broadcast %cst_32 : f32 to vector<8x128xf32>
    %149 = arith.addf %148, %147 : vector<8x128xf32>
    %150 = arith.divf %148, %149 : vector<8x128xf32>
    %151 = vector.extract_strided_slice %150 {offsets = [0, 0], sizes = [8, 32], strides = [1, 1]} : vector<8x128xf32> to vector<8x32xf32>
    %152 = vector.extract_strided_slice %150 {offsets = [0, 64], sizes = [8, 32], strides = [1, 1]} : vector<8x128xf32> to vector<8x32xf32>
    %cst_33 = arith.constant 2.000000e+00 : f32
    %153 = vector.broadcast %cst_33 : f32 to vector<8x32xf32>
    %154 = arith.mulf %153, %152 : vector<8x32xf32>
    %cst_34 = arith.constant 1.000000e+00 : f32
    %155 = vector.broadcast %cst_34 : f32 to vector<8x32xf32>
    %156 = arith.subf %154, %155 : vector<8x32xf32>
    %157 = vector.extract_strided_slice %150 {offsets = [0, 96], sizes = [8, 32], strides = [1, 1]} : vector<8x128xf32> to vector<8x32xf32>
    %158 = arith.mulf %151, %156 : vector<8x32xf32>
    %159 = math.tanh %158 : vector<8x32xf32>
    %160 = arith.mulf %157, %159 : vector<8x32xf32>
    %c0_35 = arith.constant 0 : index
    %c0_36 = arith.constant 0 : index
    %161 = vector.load %arg2[%c0_35, %c0_36] : memref<1x64xf32, #tpu.memory_space<vmem>>, vector<1x64xf32>
    %162 = vector.extract_strided_slice %161 {offsets = [0, 0], sizes = [1, 32], strides = [1, 1]} : vector<1x64xf32> to vector<1x32xf32>
    %163 = vector.broadcast %162 : vector<1x32xf32> to vector<8x32xf32>
    %164 = arith.mulf %144, %163 : vector<8x32xf32>
    %165 = vector.extract_strided_slice %161 {offsets = [0, 32], sizes = [1, 32], strides = [1, 1]} : vector<1x64xf32> to vector<1x32xf32>
    %166 = vector.broadcast %165 : vector<1x32xf32> to vector<8x32xf32>
    %167 = arith.mulf %160, %166 : vector<8x32xf32>
    %168 = arith.addf %164, %167 : vector<8x32xf32>
    %cst_37 = arith.constant dense<0.000000e+00> : vector<8xf32>
    %169 = vector.multi_reduction <add>, %168, %cst_37 [1] : vector<8x32xf32> to vector<8xf32>
    %170 = vector.shape_cast %169 : vector<8xf32> to vector<8x1xf32>
    %c0_38 = arith.constant 0 : index
    %171 = memref.load %arg3[%c0_38] : memref<1xf32, #tpu.memory_space<smem>>
    %172 = vector.broadcast %171 : f32 to vector<8x1xf32>
    %173 = arith.addf %170, %172 : vector<8x1xf32>
    %c0_39 = arith.constant 0 : index
    %c0_40 = arith.constant 0 : index
    %174 = vector.load %arg4[%c0_39, %c0_40] : memref<8x1xf32, #tpu.memory_space<vmem>>, vector<8x1xf32>
    tpu.vector_store %arg4[%c0_39, %c0_40], %173 {strides = array<i32>} : memref<8x1xf32, #tpu.memory_space<vmem>>, vector<8x1xf32>,
    return
  }
}

</mosaic_0001>

<bundles_post_ra>
// kernel: sentence_classifier_forward.1
= control target key start
LH: loop header
LB: loop body
LE: loop exit
PB: predicated region body
PF: predicated region fallthrough
CT: control target
= control target key end

     0   :  { %10 = vsyncpa [#allocation4], 0  ;;  %s760_s18 = smov [#allocation3]   ;;  %s761_s20 = smov 128   ;;  %s895_s0 = inlined_call_operand.vmem [shape: s32[48,1], index: 0, kind: input, shape index: {}]   ;;  %s896_s1 = inlined_call_operand.hbm [shape: bf16[96,256], index: 1, kind: input, shape index: {}]   ;;  %s897_s2 = inlined_call_operand.vmem [shape: f32[1,64], index: 2, kind: input, shape index: {}]   ;;  %s898_s3 = inlined_call_operand.<no memory space> [shape: f32[1], index: 3, kind: input, shape index: {}]   ;;  %s899_s4 = inlined_call_operand.vmem [shape: f32[8,1], index: 4, kind: output, shape index: {}]  }
   0x1   :  { %s17_s17 = sshll.u32 %s896_s1, 4  ;;  %s19_s19 = sshll.u32 %s760_s18, 4  ;;  %s18_s17 = int_to_ptr.hbm [resolvable:$true] %s17_s17  ;;  %s20_s19 = int_to_ptr.vmem [resolvable:$true] %s19_s19 }
   0x2   :  { %s762_s21 = smov 8  }
   0x3   :  { %25 = dma.hbm_to_vmem [thread:$0]  %s18_s17, 1536, %s20_s19, [#allocation4], %s761_s20, %s761_s20, %s762_s21  }
   0x4   :  { %758 = dma.done.wait [#allocation4], 1536  }
   0x5   :  { %759 = vsyncadd [#allocation4], 4294965760  ;;  %v763_v0 = vmov 0   ;;  %v35_v1 = vld [vmem:[%s895_s0] sm:$0xff]  ;;  %v649_v2 = vld [vmem:[#allocation3 + $0x50] sm:$0xf]  ;;  %v41_v33 = vlaneseq }
   0x6   :  { %688 = vset.pattern.permute.xlu0 %v763_v0  ;;  %689 = vset.pattern.permute.xlu1 %v763_v0  ;;  %v679_v3 = vld [vmem:[#allocation3 + $0x54] sm:$0xf0]  ;;  %v645_v4 = vld [vmem:[#allocation3 + $0x40] sm:$0xf]  ;;  %v678_v5 = vld [vmem:[#allocation3 + $0x44] sm:$0xf0] }
   0x7   :  { %690 = vset.pattern.permute.xlu2 %v763_v0  ;;  %44 = vperm.xlu0 %688, %v35_v1   ;;  %v799_v6 = vor.u32 %v679_v3, %v649_v2  ;;  %v631_v7 = vld [vmem:[#allocation3 + $0x30] sm:$0xf]  ;;  %v677_v8 = vld [vmem:[#allocation3 + $0x34] sm:$0xf0]  ;;  %v676_v9 = vld [vmem:[#allocation3 + $0x34] sm:$0xf]  ;;  %v802_v12 = vor.u32 %v678_v5, %v645_v4 }
   0x8   :  { %v632_v10 = vor.u32 %v677_v8, %v631_v7  ;;  %v633_v11 = vld [vmem:[#allocation3 + $0x38] sm:$0xf0]  ;;  %v36_v14 = vld [vmem:[%s895_s0 + $0x8] sm:$0xff]  ;;  %v623_v15 = vld [vmem:[#allocation3 + $0x20] sm:$0xf]  ;;  %v816_v35 = vand.u32 127, %v41_v33 }
   0x9   :  { %203 = vmatpush.bf16.msra.mxu2 %v799_v6  ;;  %v636_v13 = vor.u32 %v676_v9, %v633_v11  ;;  %262 = vmatpush.bf16.msra.mxu3 %v799_v6  ;;  %v675_v16 = vld [vmem:[#allocation3 + $0x24] sm:$0xf0]  ;;  %v674_v17 = vld [vmem:[#allocation3 + $0x24] sm:$0xf]  ;;  %v625_v19 = vld [vmem:[#allocation3 + $0x28] sm:$0xf0] }
   0xa   :  { %138 = vmatpush.bf16.msra.mxu0 %v632_v10  ;;  %v624_v18 = vor.u32 %v675_v16, %v623_v15  ;;  %v628_v20 = vor.u32 %v674_v17, %v625_v19  ;;  %v615_v21 = vld [vmem:[#allocation3 + $0x10] sm:$0xf]  ;;  %v673_v22 = vld [vmem:[#allocation3 + $0x14] sm:$0xf0]  ;;  %v672_v23 = vld [vmem:[#allocation3 + $0x14] sm:$0xf] }
   0xb   :  { %162 = vmatpush.bf16.msra.mxu1 %v636_v13  ;;  %v616_v24 = vor.u32 %v673_v22, %v615_v21  ;;  %v617_v25 = vld [vmem:[#allocation3 + $0x18] sm:$0xf0]  ;;  %v607_v27 = vld [vmem:[#allocation3] sm:$0xf]  ;;  %v671_v28 = vld [vmem:[#allocation3 + $0x4] sm:$0xf0] }
   0xc   :  { %v620_v26 = vor.u32 %v672_v23, %v617_v25  ;;  %v670_v29 = vld [vmem:[#allocation3 + $0x4] sm:$0xf]  ;;  %v608_v30 = vor.u32 %v671_v28, %v607_v27  ;;  %v609_v31 = vld [vmem:[#allocation3 + $0x8] sm:$0xf0]  ;;  %v764_v37 = vmov 0.0   ;;  %vm124_vm2 = vcmask 523264  }
   0xd   :  { %204 = vmatpush.bf16.msra.mxu2 %v802_v12  ;;  %263 = vmatpush.bf16.msra.mxu3 %v802_v12  ;;  %v612_v32 = vor.u32 %v670_v29, %v609_v31  ;;  %s765_s25 = smov 64   ;;  %s766_s26 = smov 32   ;;  %vm193_vm7 = vcmask 261120   ;;  %v37_v29 = vld [vmem:[%s895_s0 + $0x10] sm:$0xff] }
   0xe   :  { %139 = vmatpush.bf16.msra.mxu0 %v624_v18  ;;  %s767_s10 = smov 96  }
   0xf   :  { %47 = vperm.xlu0 %688, %v36_v14   ;;  %163 = vmatpush.bf16.msra.mxu1 %v628_v20 }
  0x10   :  { %205 = vmatmul.bf16.vlgmr.msra.gmra.mxu2 %v763_v0 }
  0x11   :  { %321 = vmatpush.bf16.msrb.mxu2 %v799_v6  ;;  %380 = vmatpush.bf16.msrb.mxu3 %v799_v6 }
  0x12   :  { %140 = vmatpush.bf16.msra.mxu0 %v616_v24 }
  0x13   :  { %164 = vmatpush.bf16.msra.mxu1 %v620_v26 }
  0x15   :  { %322 = vmatpush.bf16.msrb.mxu2 %v802_v12  ;;  %381 = vmatpush.bf16.msrb.mxu3 %v802_v12 }
  0x16   :  { %141 = vmatpush.bf16.msra.mxu0 %v608_v30 }
  0x17   :  { %165 = vmatpush.bf16.msra.mxu1 %v612_v32 }
  0x19   :  { %439 = vmatpush.bf16.msra.mxu2 %v799_v6 }
  0x1d   :  { %440 = vmatpush.bf16.msra.mxu2 %v802_v12 }
  0x79   :  { %v45_v34 = vpop.permute.xlu0 %44 }
  0x7a   :  { %vm61_vm0 = vcmp.eq.s32.totalorder %v45_v34, %v816_v35  ;;  %v38_v34 = vld [vmem:[%s895_s0 + $0x18] sm:$0xff] }
  0x7b   :  { %v67_v38 = vsel %vm61_vm0, 1.0, %v764_v37 }
  0x81   :  { %v48_v36 = vpop.permute.xlu0 %47 }
  0x82   :  { %vm62_vm1 = vcmp.eq.s32.totalorder %v48_v36, %v816_v35 }
  0x83   :  { %v68_v39 = vsel %vm62_vm1, 1.0, %v764_v37 }
  0x84   :  { %v73_v40 = vpack.c.bf16 %v68_v39, %v67_v38 }
  0x86   :  { %637 = vmatmul.msk.bf16.vlgmr.msra.gmra.mxu0 %vm124_vm2, %v73_v40  ;;  %640 = vmatmul.msk.bf16.vlgmr.msra.gmra.mxu1 %vm124_vm2, %v73_v40 }
  0x93   :  { %v206_v41 = vpop.f32.mrf.mxu2 }
  0x9b   :  { %v208_v42 = vpop.f32.mrf.mxu2 }
 0x103   :  { %v143_v43 = vpop.f32.mrf.mxu0  ;;  %v167_v44 = vpop.f32.mrf.mxu1 }
 0x104   :  { %v210_v45 = vadd.f32 %v206_v41, %v143_v43 }
 0x106   :  { %v651_v46 = vmul.f32 -1.442695, %v210_v45 }
 0x108   :  { %692 = vpow2.f32 %v651_v46 }
 0x10b   :  { %v168_v47 = vpop.f32.mrf.mxu1  ;;  %v145_v9 = vpop.f32.mrf.mxu0 }
 0x10e   :  { %v693_v48 = vpop.eup %692 }
 0x10f   :  { %v214_v49 = vadd.f32 1.0, %v693_v48 }
 0x111   :  { %694 = vrcp.f32 %v214_v49  ;;  %v226_v53 = vand.u32 2147483648, %v214_v49  ;;  %v224_v55 = vand.u32 2147483647, %v214_v49  ;;  %vm220_vm4 = vweird.f32 %v214_v49 }
 0x113   :  { %v227_v57 = vor.u32 1.1754944e-38, %v226_v53  ;;  %vm225_vm6 = vcmp.eq.f32.partialorder %v224_v55, 8.507059e+37 }
 0x117   :  { %v695_v50 = vpop.eup %694 }
 0x118   :  { %v216_v51 = vmul.f32 %v695_v50, %v214_v49  ;;  %vm221_vm3 = vweird.f32 %v695_v50 }
 0x119   :  { %vm222_vm5 = vmor %vm220_vm4, %vm221_vm3 }
 0x11a   :  { %v217_v52 = vsub.f32 1.0, %v216_v51 }
 0x11c   :  { %v218_v54 = vmul.f32 %v695_v50, %v217_v52 }
 0x11e   :  { %v219_v56 = vadd.f32 %v695_v50, %v218_v54 }
 0x120   :  { %v223_v58 = vsel %vm222_vm5, %v695_v50, %v219_v56 }
 0x121   :  { %v228_v59 = vsel %vm225_vm6, %v227_v57, %v223_v58 }
 0x122   :  { %v230_v60 = vmul.f32 2.0, %v228_v59  ;;  %v232_v0 = vmul.f32 0.0, %v228_v59 }
 0x124   :  { %v652_v61 = vadd.f32 -1.0, %v230_v60 }
 0x126   :  { %234 = vrot.lane.b32.xlu1 %v652_v61, %s765_s25 }
 0x198   :  { %v235_v62 = vpop.permute.xlu1 %234 }
 0x199   :  { %v237_v63 = vmul.f32 %v235_v62, %v228_v59 }
 0x19b   :  { %239 = vrot.lane.b32.xlu1 %v237_v63, %s766_s26 }
 0x20d   :  { %v240_v1 = vpop.permute.xlu1 %239 }
 0x20e   :  { %v242_v2 = vadd.f32 %v240_v1, %v232_v0 }
 0x210   :  { %696 = vtanh.f32 %v242_v2 }
 0x216   :  { %v697_v3 = vpop.eup %696 }
 0x217   :  { %245 = vrot.lane.b32.xlu2 %v697_v3, %s765_s25 }
 0x271   :  { %v246_v4 = vpop.permute.xlu2 %245 }
 0x272   :  { %v248_v5 = vmul.f32 %v246_v4, %v228_v59 }
 0x274   :  { %v249_v7 = vpack.c.bf16 %v248_v5, %v248_v5 }
 0x276   :  { %251 = vrot.lane.b32.xlu2 %v249_v7, %s766_s26 }
 0x2d0   :  { %v252_v8 = vpop.permute.xlu2 %251 }
 0x2d1   :  { %653 = vmatmul.msk.bf16.vlgmr.msra.gmra.mxu3 %vm193_vm7, %v252_v8 }
 0x2d2   :  { %498 = vmatpush.bf16.msra.mxu3 %v799_v6 }
 0x2d6   :  { %499 = vmatpush.bf16.msra.mxu3 %v802_v12 }
 0x354   :  { %v265_v10 = vpop.f32.mrf.mxu3 }
 0x355   :  { %v269_v11 = vadd.f32 %v265_v10, %v145_v9 }
 0x357   :  { %v654_v13 = vmul.f32 -1.442695, %v269_v11 }
 0x359   :  { %698 = vpow2.f32 %v654_v13 }
 0x35c   :  { %v267_v14 = vpop.f32.mrf.mxu3 }
 0x35f   :  { %v699_v15 = vpop.eup %698 }
 0x360   :  { %v273_v16 = vadd.f32 1.0, %v699_v15 }
 0x362   :  { %700 = vrcp.f32 %v273_v16  ;;  %v285_v20 = vand.u32 2147483648, %v273_v16  ;;  %v283_v22 = vand.u32 2147483647, %v273_v16  ;;  %vm279_vm9 = vweird.f32 %v273_v16 }
 0x364   :  { %v286_v6 = vor.u32 1.1754944e-38, %v285_v20  ;;  %vm284_vm11 = vcmp.eq.f32.partialorder %v283_v22, 8.507059e+37 }
 0x368   :  { %v701_v17 = vpop.eup %700 }
 0x369   :  { %v275_v18 = vmul.f32 %v701_v17, %v273_v16  ;;  %vm280_vm8 = vweird.f32 %v701_v17 }
 0x36a   :  { %vm281_vm10 = vmor %vm279_vm9, %vm280_vm8 }
 0x36b   :  { %v276_v19 = vsub.f32 1.0, %v275_v18 }
 0x36d   :  { %v277_v21 = vmul.f32 %v701_v17, %v276_v19 }
 0x36f   :  { %v278_v23 = vadd.f32 %v701_v17, %v277_v21 }
 0x371   :  { %v282_v12 = vsel %vm281_vm10, %v701_v17, %v278_v23 }
 0x372   :  { %v287_v24 = vsel %vm284_vm11, %v286_v6, %v282_v12 }
 0x373   :  { %v289_v25 = vmul.f32 2.0, %v287_v24  ;;  %v291_v30 = vmul.f32 %v287_v24, %v242_v2 }
 0x375   :  { %v655_v26 = vadd.f32 -1.0, %v289_v25 }
 0x377   :  { %293 = vrot.lane.b32.xlu0 %v655_v26, %s765_s25 }
 0x3e9   :  { %v294_v27 = vpop.permute.xlu0 %293 }
 0x3ea   :  { %v296_v28 = vmul.f32 %v294_v27, %v287_v24 }
 0x3ec   :  { %298 = vrot.lane.b32.xlu1 %v296_v28, %s766_s26 }
 0x3f4   :  { %50 = vperm.xlu1 %689, %v37_v29  }
 0x45e   :  { %v299_v31 = vpop.permute.xlu1 %298 }
 0x45f   :  { %v301_v32 = vadd.f32 %v299_v31, %v291_v30 }
 0x461   :  { %702 = vtanh.f32 %v301_v32 }
 0x466   :  { %v51_v40 = vpop.permute.xlu1 %50 }
 0x467   :  { %v703_v33 = vpop.eup %702  ;;  %vm63_vm12 = vcmp.eq.s32.totalorder %v51_v40, %v816_v35 }
 0x468   :  { %304 = vrot.lane.b32.xlu2 %v703_v33, %s765_s25  ;;  %v69_v42 = vsel %vm63_vm12, 1.0, %v764_v37 }
 0x470   :  { %53 = vperm.xlu2 %690, %v38_v34   ;;  %v39_v34 = vld [vmem:[%s895_s0 + $0x20] sm:$0xff] }
 0x4c2   :  { %v305_v36 = vpop.permute.xlu2 %304 }
 0x4c3   :  { %v307_v38 = vmul.f32 %v305_v36, %v287_v24 }
 0x4c5   :  { %v308_v39 = vpack.c.bf16 %v307_v38, %v307_v38 }
 0x4c7   :  { %310 = vrot.lane.b32.xlu0 %v308_v39, %s766_s26 }
 0x4ca   :  { %v54_v41 = vpop.permute.xlu2 %53 }
 0x4cb   :  { %vm64_vm13 = vcmp.eq.s32.totalorder %v54_v41, %v816_v35  ;;  %v40_v41 = vld [vmem:[%s895_s0 + $0x28] sm:$0xff] }
 0x4cc   :  { %v70_v43 = vsel %vm64_vm13, 1.0, %v764_v37 }
 0x4cd   :  { %v74_v44 = vpack.c.bf16 %v70_v43, %v69_v42 }
 0x4cf   :  { %638 = vmatmul.msk.bf16.gmra.mxu0 %vm124_vm2, %v74_v44  ;;  %641 = vmatmul.msk.bf16.gmra.mxu1 %vm124_vm2, %v74_v44 }
 0x539   :  { %v311_v45 = vpop.permute.xlu0 %310 }
 0x53a   :  { %656 = vmatmul.msk.bf16.vlgmr.msrb.gmra.mxu2 %vm193_vm7, %v311_v45 }
 0x54c   :  { %v170_v46 = vpop.f32.mrf.mxu1  ;;  %v148_v48 = vpop.f32.mrf.mxu0 }
 0x554   :  { %v171_v47 = vpop.f32.mrf.mxu1  ;;  %v150_v15 = vpop.f32.mrf.mxu0 }
 0x5bd   :  { %v324_v49 = vpop.f32.mrf.mxu2 }
 0x5be   :  { %v328_v50 = vadd.f32 %v324_v49, %v148_v48 }
 0x5c0   :  { %v657_v51 = vmul.f32 -1.442695, %v328_v50 }
 0x5c2   :  { %704 = vpow2.f32 %v657_v51 }
 0x5c5   :  { %v326_v52 = vpop.f32.mrf.mxu2 }
 0x5c8   :  { %v705_v53 = vpop.eup %704 }
 0x5c9   :  { %v332_v54 = vadd.f32 1.0, %v705_v53 }
 0x5cb   :  { %706 = vrcp.f32 %v332_v54  ;;  %v344_v58 = vand.u32 2147483648, %v332_v54  ;;  %v342_v60 = vand.u32 2147483647, %v332_v54  ;;  %vm338_vm15 = vweird.f32 %v332_v54 }
 0x5cd   :  { %v345_v62 = vor.u32 1.1754944e-38, %v344_v58  ;;  %vm343_vm1 = vcmp.eq.f32.partialorder %v342_v60, 8.507059e+37 }
 0x5d1   :  { %v707_v55 = vpop.eup %706 }
 0x5d2   :  { %v334_v56 = vmul.f32 %v707_v55, %v332_v54  ;;  %vm339_vm14 = vweird.f32 %v707_v55 }
 0x5d3   :  { %vm340_vm0 = vmor %vm338_vm15, %vm339_vm14 }
 0x5d4   :  { %v335_v57 = vsub.f32 1.0, %v334_v56 }
 0x5d6   :  { %v336_v59 = vmul.f32 %v707_v55, %v335_v57 }
 0x5d8   :  { %v337_v61 = vadd.f32 %v707_v55, %v336_v59 }
 0x5da   :  { %v341_v63 = vsel %vm340_vm0, %v707_v55, %v337_v61 }
 0x5db   :  { %v346_v0 = vsel %vm343_vm1, %v345_v62, %v341_v63 }
 0x5dc   :  { %v348_v1 = vmul.f32 2.0, %v346_v0  ;;  %v350_v5 = vmul.f32 %v346_v0, %v301_v32 }
 0x5de   :  { %v658_v2 = vadd.f32 -1.0, %v348_v1 }
 0x5e0   :  { %352 = vrot.lane.b32.xlu0 %v658_v2, %s765_s25 }
 0x652   :  { %v353_v3 = vpop.permute.xlu0 %352 }
 0x653   :  { %v355_v4 = vmul.f32 %v353_v3, %v346_v0 }
 0x655   :  { %357 = vrot.lane.b32.xlu1 %v355_v4, %s766_s26 }
 0x6c7   :  { %v358_v7 = vpop.permute.xlu1 %357 }
 0x6c8   :  { %v360_v8 = vadd.f32 %v358_v7, %v350_v5 }
 0x6ca   :  { %708 = vtanh.f32 %v360_v8 }
 0x6d0   :  { %v709_v9 = vpop.eup %708 }
 0x6d1   :  { %363 = vrot.lane.b32.xlu2 %v709_v9, %s765_s25 }
 0x72b   :  { %v364_v10 = vpop.permute.xlu2 %363 }
 0x72c   :  { %v366_v11 = vmul.f32 %v364_v10, %v346_v0 }
 0x72e   :  { %v367_v13 = vpack.c.bf16 %v366_v11, %v366_v11 }
 0x730   :  { %369 = vrot.lane.b32.xlu0 %v367_v13, %s766_s26 }
 0x7a2   :  { %v370_v14 = vpop.permute.xlu0 %369 }
 0x7a3   :  { %659 = vmatmul.msk.bf16.vlgmr.msrb.gmra.mxu3 %vm193_vm7, %v370_v14 }
 0x826   :  { %v383_v16 = vpop.f32.mrf.mxu3 }
 0x827   :  { %v387_v17 = vadd.f32 %v383_v16, %v150_v15 }
 0x829   :  { %v660_v18 = vmul.f32 -1.442695, %v387_v17 }
 0x82b   :  { %710 = vpow2.f32 %v660_v18 }
 0x82e   :  { %v385_v19 = vpop.f32.mrf.mxu3 }
 0x831   :  { %v711_v20 = vpop.eup %710 }
 0x832   :  { %v391_v21 = vadd.f32 1.0, %v711_v20 }
 0x834   :  { %712 = vrcp.f32 %v391_v21  ;;  %v403_v12 = vand.u32 2147483648, %v391_v21  ;;  %v401_v25 = vand.u32 2147483647, %v391_v21  ;;  %vm397_vm4 = vweird.f32 %v391_v21 }
 0x836   :  { %v404_v27 = vor.u32 1.1754944e-38, %v403_v12  ;;  %vm402_vm6 = vcmp.eq.f32.partialorder %v401_v25, 8.507059e+37 }
 0x83a   :  { %v713_v22 = vpop.eup %712 }
 0x83b   :  { %v393_v23 = vmul.f32 %v713_v22, %v391_v21  ;;  %vm398_vm3 = vweird.f32 %v713_v22 }
 0x83c   :  { %vm399_vm5 = vmor %vm397_vm4, %vm398_vm3 }
 0x83d   :  { %v394_v6 = vsub.f32 1.0, %v393_v23 }
 0x83f   :  { %v395_v24 = vmul.f32 %v713_v22, %v394_v6 }
 0x841   :  { %v396_v26 = vadd.f32 %v713_v22, %v395_v24 }
 0x843   :  { %v400_v28 = vsel %vm399_vm5, %v713_v22, %v396_v26 }
 0x844   :  { %v405_v29 = vsel %vm402_vm6, %v404_v27, %v400_v28  ;;  %vm598_vm6 = vcmask 7168  }
 0x845   :  { %v407_v30 = vmul.f32 2.0, %v405_v29  ;;  %v409_v36 = vmul.f32 %v405_v29, %v360_v8 }
 0x847   :  { %v661_v31 = vadd.f32 -1.0, %v407_v30 }
 0x849   :  { %411 = vrot.lane.b32.xlu1 %v661_v31, %s765_s25 }
 0x8bb   :  { %v412_v32 = vpop.permute.xlu1 %411 }
 0x8bc   :  { %v414_v33 = vmul.f32 %v412_v32, %v405_v29 }
 0x8be   :  { %416 = vrot.lane.b32.xlu2 %v414_v33, %s766_s26 }
 0x8c6   :  { %56 = vperm.xlu2 %690, %v39_v34  }
 0x918   :  { %v417_v38 = vpop.permute.xlu2 %416 }
 0x919   :  { %v419_v39 = vadd.f32 %v417_v38, %v409_v36 }
 0x91b   :  { %714 = vtanh.f32 %v419_v39 }
 0x920   :  { %v57_v45 = vpop.permute.xlu2 %56 }
 0x921   :  { %v715_v40 = vpop.eup %714  ;;  %vm65_vm8 = vcmp.eq.s32.totalorder %v57_v45, %v816_v35 }
 0x922   :  { %422 = vrot.lane.b32.xlu0 %v715_v40, %s765_s25  ;;  %v71_v47 = vsel %vm65_vm8, 1.0, %v764_v37 }
 0x92a   :  { %59 = vperm.xlu0 %688, %v40_v41  }
 0x994   :  { %v423_v42 = vpop.permute.xlu0 %422 }
 0x995   :  { %v425_v43 = vmul.f32 %v423_v42, %v405_v29 }
 0x997   :  { %v426_v44 = vpack.c.bf16 %v425_v43, %v425_v43 }
 0x999   :  { %428 = vrot.lane.b32.xlu1 %v426_v44, %s766_s26 }
 0x99c   :  { %v60_v46 = vpop.permute.xlu0 %59 }
 0x99d   :  { %vm66_vm9 = vcmp.eq.s32.totalorder %v60_v46, %v816_v35 }
 0x99e   :  { %v72_v48 = vsel %vm66_vm9, 1.0, %v764_v37 }
 0x99f   :  { %v75_v49 = vpack.c.bf16 %v72_v48, %v71_v47 }
 0x9a1   :  { %639 = vmatmul.msk.bf16.gmra.mxu0 %vm124_vm2, %v75_v49  ;;  %642 = vmatmul.msk.bf16.gmra.mxu1 %vm124_vm2, %v75_v49 }
 0xa0b   :  { %v429_v50 = vpop.permute.xlu1 %428 }
 0xa0c   :  { %662 = vmatmul.msk.bf16.vlgmr.msra.gmra.mxu2 %vm193_vm7, %v429_v50 }
 0xa1e   :  { %v173_v51 = vpop.f32.mrf.mxu1  ;;  %v153_v52 = vpop.f32.mrf.mxu0 }
 0xa26   :  { %v174_v13 = vpop.f32.mrf.mxu1  ;;  %v155_v31 = vpop.f32.mrf.mxu0 }
 0xa27   :  { %v668_v14 = vmul.f32 -1.442695, %v174_v13 }
 0xa8f   :  { %v442_v53 = vpop.f32.mrf.mxu2 }
 0xa90   :  { %v446_v54 = vadd.f32 %v442_v53, %v153_v52  ;;  %v691_v52 = vld [vmem:[%s897_s2] ss:$0 sm:$0xff] }
 0xa92   :  { %v663_v55 = vmul.f32 -1.442695, %v446_v54 }
 0xa94   :  { %716 = vpow2.f32 %v663_v55 }
 0xa97   :  { %v444_v56 = vpop.f32.mrf.mxu2 }
 0xa9a   :  { %v717_v35 = vpop.eup %716 }
 0xa9b   :  { %v450_v57 = vadd.f32 1.0, %v717_v35 }
 0xa9d   :  { %718 = vrcp.f32 %v450_v57  ;;  %v462_v60 = vand.u32 2147483648, %v450_v57  ;;  %v460_v62 = vand.u32 2147483647, %v450_v57  ;;  %vm456_vm2 = vweird.f32 %v450_v57 }
 0xa9f   :  { %v463_v0 = vor.u32 1.1754944e-38, %v462_v60  ;;  %vm461_vm12 = vcmp.eq.f32.partialorder %v460_v62, 8.507059e+37 }
 0xaa3   :  { %v719_v58 = vpop.eup %718 }
 0xaa4   :  { %v452_v37 = vmul.f32 %v719_v58, %v450_v57  ;;  %vm457_vm10 = vweird.f32 %v719_v58 }
 0xaa5   :  { %vm458_vm11 = vmor %vm456_vm2, %vm457_vm10 }
 0xaa6   :  { %v453_v59 = vsub.f32 1.0, %v452_v37 }
 0xaa8   :  { %v454_v61 = vmul.f32 %v719_v58, %v453_v59 }
 0xaaa   :  { %v455_v63 = vadd.f32 %v719_v58, %v454_v61 }
 0xaac   :  { %v459_v1 = vsel %vm458_vm11, %v719_v58, %v455_v63 }
 0xaad   :  { %v464_v2 = vsel %vm461_vm12, %v463_v0, %v459_v1 }
 0xaae   :  { %v466_v3 = vmul.f32 2.0, %v464_v2  ;;  %v468_v8 = vmul.f32 %v464_v2, %v419_v39 }
 0xab0   :  { %v664_v4 = vadd.f32 -1.0, %v466_v3 }
 0xab2   :  { %470 = vrot.lane.b32.xlu1 %v664_v4, %s765_s25 }
 0xb24   :  { %v471_v5 = vpop.permute.xlu1 %470 }
 0xb25   :  { %v473_v7 = vmul.f32 %v471_v5, %v464_v2 }
 0xb27   :  { %475 = vrot.lane.b32.xlu2 %v473_v7, %s766_s26 }
 0xb81   :  { %v476_v9 = vpop.permute.xlu2 %475 }
 0xb82   :  { %v872_v10 = vadd.f32 %v476_v9, %v468_v8  ;;  %v596_v8 = vstv %s898_s3 }
 0xb84   :  { %720 = vtanh.f32 %v872_v10 }
 0xb85   :  { %722 = vpow2.f32 %v668_v14 }
 0xb8a   :  { %v721_v11 = vpop.eup %720 }
 0xb8b   :  { %481 = vrot.lane.b32.xlu0 %v721_v11, %s765_s25  ;;  %v723_v15 = vpop.eup %722 }
 0xb8c   :  { %v547_v16 = vadd.f32 1.0, %v723_v15 }
 0xb8e   :  { %724 = vrcp.f32 %v547_v16  ;;  %v559_v22 = vand.u32 2147483648, %v547_v16  ;;  %vm553_vm14 = vweird.f32 %v547_v16  ;;  %v557_v23 = vand.u32 2147483647, %v547_v16 }
 0xb90   :  { %v560_v25 = vor.u32 1.1754944e-38, %v559_v22  ;;  %vm558_vm0 = vcmp.eq.f32.partialorder %v557_v23, 8.507059e+37 }
 0xb94   :  { %v725_v17 = vpop.eup %724 }
 0xb95   :  { %v549_v18 = vmul.f32 %v725_v17, %v547_v16  ;;  %vm554_vm13 = vweird.f32 %v725_v17 }
 0xb96   :  { %vm555_vm15 = vmor %vm553_vm14, %vm554_vm13 }
 0xb97   :  { %v550_v19 = vsub.f32 1.0, %v549_v18 }
 0xb99   :  { %v551_v20 = vmul.f32 %v725_v17, %v550_v19 }
 0xb9b   :  { %v552_v21 = vadd.f32 %v725_v17, %v551_v20 }
 0xb9d   :  { %v556_v24 = vsel %vm555_vm15, %v725_v17, %v552_v21 }
 0xb9e   :  { %v561_v27 = vsel %vm558_vm0, %v560_v25, %v556_v24 }
 0xb9f   :  { %v563_v28 = vmul.f32 2.0, %v561_v27 }
 0xba1   :  { %v669_v29 = vadd.f32 -1.0, %v563_v28 }
 0xbfd   :  { %v482_v6 = vpop.permute.xlu0 %481 }
 0xbfe   :  { %v484_v12 = vmul.f32 %v482_v6, %v464_v2 }
 0xc00   :  { %v485_v26 = vpack.c.bf16 %v484_v12, %v484_v12 }
 0xc02   :  { %487 = vrot.lane.b32.xlu1 %v485_v26, %s766_s26 }
 0xc0a   :  { %566 = vrot.lane.b32.xlu1 %v669_v29, %s765_s25 }
 0xc12   :  { %579 = vrot.lane.b32.xlu1 %v691_v52, %s767_s10 }
 0xc74   :  { %v488_v30 = vpop.permute.xlu1 %487 }
 0xc75   :  { %665 = vmatmul.msk.bf16.vlgmr.msra.gmra.mxu3 %vm193_vm7, %v488_v30 }
 0xc7c   :  { %v567_v53 = vpop.permute.xlu1 %566 }
 0xc7d   :  { %v569_v54 = vmul.f32 %v567_v53, %v561_v27 }
 0xc84   :  { %v580_v63 = vpop.permute.xlu1 %579 }
 0xcf8   :  { %v501_v32 = vpop.f32.mrf.mxu3 }
 0xcf9   :  { %v505_v33 = vadd.f32 %v501_v32, %v155_v31 }
 0xcfb   :  { %v666_v34 = vmul.f32 -1.442695, %v505_v33 }
 0xcfd   :  { %726 = vpow2.f32 %v666_v34 }
 0xd00   :  { %v503_v36 = vpop.f32.mrf.mxu3 }
 0xd03   :  { %v727_v38 = vpop.eup %726 }
 0xd04   :  { %v509_v39 = vadd.f32 1.0, %v727_v38 }
 0xd06   :  { %728 = vrcp.f32 %v509_v39  ;;  %v521_v43 = vand.u32 2147483648, %v509_v39  ;;  %v519_v45 = vand.u32 2147483647, %v509_v39  ;;  %vm515_vm3 = vweird.f32 %v509_v39 }
 0xd07   :  { %730 = vtanh.f32 %v569_v54 }
 0xd08   :  { %v522_v47 = vor.u32 1.1754944e-38, %v521_v43  ;;  %vm520_vm5 = vcmp.eq.f32.partialorder %v519_v45, 8.507059e+37 }
 0xd0c   :  { %v729_v40 = vpop.eup %728 }
 0xd0d   :  { %v511_v41 = vmul.f32 %v729_v40, %v509_v39  ;;  %vm516_vm1 = vweird.f32 %v729_v40  ;;  %v731_v35 = vpop.eup %730 }
 0xd0e   :  { %vm517_vm4 = vmor %vm515_vm3, %vm516_vm1 }
 0xd0f   :  { %v512_v42 = vsub.f32 1.0, %v511_v41 }
 0xd11   :  { %v513_v44 = vmul.f32 %v729_v40, %v512_v42 }
 0xd13   :  { %v514_v46 = vadd.f32 %v729_v40, %v513_v44 }
 0xd15   :  { %v518_v48 = vsel %vm517_vm4, %v729_v40, %v514_v46 }
 0xd16   :  { %v523_v49 = vsel %vm520_vm5, %v522_v47, %v518_v48 }
 0xd17   :  { %v525_v50 = vmul.f32 2.0, %v523_v49  ;;  %v527_v57 = vmul.f32 %v523_v49, %v872_v10 }
 0xd19   :  { %v667_v51 = vadd.f32 -1.0, %v525_v50 }
 0xd1b   :  { %529 = vrot.lane.b32.xlu2 %v667_v51, %s765_s25 }
 0xd75   :  { %v530_v55 = vpop.permute.xlu2 %529 }
 0xd76   :  { %v532_v56 = vmul.f32 %v530_v55, %v523_v49 }
 0xd78   :  { %534 = vrot.lane.b32.xlu0 %v532_v56, %s766_s26 }
 0xd80   :  { %572 = vrot.lane.b32.xlu0 %v731_v35, %s767_s10 }
 0xdea   :  { %v535_v58 = vpop.permute.xlu0 %534 }
 0xdeb   :  { %v537_v37 = vadd.f32 %v535_v58, %v527_v57 }
 0xded   :  { %732 = vtanh.f32 %v537_v37 }
 0xdf2   :  { %v573_v61 = vpop.permute.xlu0 %572 }
 0xdf3   :  { %v733_v59 = vpop.eup %732  ;;  %v575_v0 = vmul.f32 %v573_v61, %v561_v27 }
 0xdf4   :  { %540 = vrot.lane.b32.xlu2 %v733_v59, %s765_s25 }
 0xdfc   :  { %583 = vrot.lane.b32.xlu2 %v691_v52, %s765_s25 }
 0xe4e   :  { %v541_v60 = vpop.permute.xlu2 %540 }
 0xe4f   :  { %v543_v62 = vmul.f32 %v541_v60, %v523_v49 }
 0xe51   :  { %v582_v2 = vmul.f32 %v580_v63, %v543_v62 }
 0xe56   :  { %v584_v1 = vpop.permute.xlu2 %583 }
 0xe57   :  { %v586_v3 = vmul.f32 %v584_v1, %v575_v0 }
 0xe59   :  { %v587_v4 = vadd.f32 %v586_v3, %v582_v2 }
 0xe5b   :  { %589 = vrot.lane.b32.xlu0 %v587_v4, %s766_s26 }
 0xecd   :  { %v590_v5 = vpop.permute.xlu0 %589 }
 0xece   :  { %v592_v7 = vsel %vm193_vm7, %v590_v5, 0.0 }
 0xecf   :  { %593 = vadd.xlane.f32.xlu1 %v592_v7 }
 0xf42   :  { %v594_v9 = vpop.xlane.xlu1 %593 }
 0xf43   :  { %v597_v10 = vadd.f32 %v596_v8, %v594_v9 }
 0xf45   :  { %599 = vst.msk [vmem:[%s899_s4] sm:$0xff] %vm598_vm6, %v597_v10 }
 0xf46   :  { %604 = vsyncpa [#allocation4], 1 }

</bundles_post_ra>
